<compile_context>
chip_gen: v6e
topology: v6e:2x2x1
jax: 0.10.0
libtpu: 0.0.40
codegen_flags: <defaults>
</compile_context>

<pallas_src>
import jax
import jax.numpy as jnp
from jax.experimental import pallas as pl
from jax.experimental.pallas import tpu as pltpu


def _round_up(x, m):
    return ((x + m - 1) // m) * m


# --------------------------------------------------------------------------- #
# Kernel: the whole Residual_stack fused into one pallas_call.
# --------------------------------------------------------------------------- #
def _make_stack_kernel(dilations, Cp, TL, Wbuf, H, L, n_tiles):
    nb = len(dilations)

    # H_next[i] = sum of dilations of the blocks AFTER block i
    # (how much halo of block i's output is still needed downstream).
    H_next = []
    s = 0
    for d in reversed(dilations):
        H_next.append(s)
        s += d
    H_next = H_next[::-1]
    assert s == H

    # Buffer column holding global sample L-1, for the tiles whose window can
    # contain the right boundary (only the last two tiles, since TL >= H).
    c_last = H + (L - 1 - (n_tiles - 1) * TL)
    right_fix = [(n_tiles - 1, c_last)]
    if n_tiles >= 2:
        right_fix.append((n_tiles - 2, c_last + TL))

    def kernel(x_hbm, wcat_ref, w2_ref, bab_ref, bsk_ref, b2_ref,
               o_ref, buf, sem):
        b = pl.program_id(0)
        j = pl.program_id(1)

        # ---- load the overlapping halo window straight from HBM ----------- #
        start = pl.multiple_of(j * TL, 128)      # 128-aligned DMA start
        cp = pltpu.make_async_copy(x_hbm.at[b, :, pl.ds(start, Wbuf)], buf, sem)
        cp.start()
        cp.wait()

        # Column c of `buf` holds sample (j*TL - H + c); block i's output is
        # written back in place over exactly the columns still needed.
        for i, d in enumerate(dilations):
            hn = H_next[i]

            # ---- ReflectionPad1d(d) of this block's input, boundaries only - #
            @pl.when(j == 0)
            def _left(d=d):
                for k in range(1, d + 1):                    # x[-k] := x[k]
                    buf[:, H - k:H - k + 1] = buf[:, H + k:H + k + 1]

            for jj, cR in right_fix:
                if jj < 0 or cR + d > Wbuf - 1:
                    continue                                  # never needed

                @pl.when(j == jj)
                def _right(cR=cR, d=d):
                    for k in range(1, d + 1):                # x[L-1+k] := x[L-1-k]
                        buf[:, cR + k:cR + k + 1] = buf[:, cR - k:cR - k + 1]

            # ---- gated residual block -------------------------------------- #
            T = TL + 2 * hn                   # output width still needed
            base = H - hn - d                 # column of the (t - d) tap
            xl = buf[:, base:base + T]
            xc = buf[:, base + d:base + d + T]
            xr = buf[:, base + 2 * d:base + 2 * d + T]

            # One MXU pass: K-stacked taps; conv1 (a|b) and conv_skip fused.
            xcat = jnp.concatenate([xl, xc, xr], axis=0).astype(jnp.bfloat16)
            h = jnp.dot(wcat_ref[i], xcat, preferred_element_type=jnp.float32)
            ab = h[:2 * Cp] + bab_ref[i]                      # conv1 pre-act
            skip = h[2 * Cp:] + bsk_ref[i]                    # conv_skip(x)

            g = jnp.tanh(ab[:Cp]) * jax.nn.sigmoid(ab[Cp:])   # gating (f32)
            out = (jnp.dot(w2_ref[i], g.astype(jnp.bfloat16),
                           preferred_element_type=jnp.float32)
                   + b2_ref[i] + skip)

            if i == nb - 1:
                o_ref[0] = out.astype(o_ref.dtype)            # (Cp, TL)
            else:
                buf[:, base + d:base + d + T] = out           # stays in VMEM

    return kernel


# --------------------------------------------------------------------------- #
# Parameter packing (done once at model-build time, NOT in the forward path).
# --------------------------------------------------------------------------- #
def _weight_norm(v, g):
    # nn.utils.weight_norm (dim=0): w = g * v / ||v||, norm over (in, kernel).
    norm = jnp.sqrt(jnp.sum(v * v, axis=(1, 2), keepdims=True))
    return g * v / norm


def pack_stack_params(raw_params, channels):
    """Pad channels to a multiple of 8 and pre-merge weights per block."""
    C = channels
    Cp = _round_up(max(C, 8), 8)
    dC = Cp - C
    f32, bf16 = jnp.float32, jnp.bfloat16

    def pad2(w):                                   # (C, C) -> (Cp, Cp)
        return jnp.pad(w, ((0, dC), (0, dC)))

    wcats, w2s, babs, bsks, b2s = [], [], [], [], []
    for p in raw_params:
        w_skip = _weight_norm(p['skip_v'], p['skip_g'])[:, :, 0]   # (C, C)
        w1 = _weight_norm(p['c1_v'], p['c1_g'])                    # (2C, C, 3)
        w2 = _weight_norm(p['c2_v'], p['c2_g'])[:, :, 0]           # (C, C)

        wa, wb = w1[:C], w1[C:]
        taps = [jnp.concatenate([pad2(wa[:, :, k]), pad2(wb[:, :, k])], axis=0)
                for k in range(3)]                                 # 3 x (2Cp, Cp)
        top = jnp.concatenate(taps, axis=1)                        # (2Cp, 3Cp)
        z = jnp.zeros((Cp, Cp), f32)
        bot = jnp.concatenate([z, pad2(w_skip), z], axis=1)        # (Cp, 3Cp)
        wcats.append(jnp.concatenate([top, bot], axis=0).astype(bf16))
        w2s.append(pad2(w2).astype(bf16))

        b1 = p['c1_b']
        babs.append(jnp.concatenate([jnp.pad(b1[:C], (0, dC)),
                                     jnp.pad(b1[C:], (0, dC))]).reshape(2 * Cp, 1))
        bsks.append(jnp.pad(p['skip_b'], (0, dC)).reshape(Cp, 1))
        b2s.append(jnp.pad(p['c2_b'], (0, dC)).reshape(Cp, 1))

    return (jnp.stack(wcats), jnp.stack(w2s),
            jnp.stack(babs).astype(f32), jnp.stack(bsks).astype(f32),
            jnp.stack(b2s).astype(f32))


# --------------------------------------------------------------------------- #
# Forward pass (one fused pallas_call for the whole stack).
# --------------------------------------------------------------------------- #
def residual_stack_forward(x, packed):
    wcat, w2, b_ab, b_sk, b2 = packed
    nb = wcat.shape[0]
    Cp = w2.shape[-1]
    dilations = [3 ** i for i in range(nb)]
    H = sum(dilations)

    B, C, L = x.shape
    assert C <= Cp
    assert all(d < L for d in dilations), "ReflectionPad1d needs pad < length"

    # Lane-dense L tiles (128-multiple), capped for VMEM friendliness.
    TL = min(1024, _round_up(L, 128))
    assert H <= TL, "too many residual blocks for this tile width"
    n_tiles = -(-L // TL)
    L_pad = n_tiles * TL
    Wbuf = _round_up(TL + 2 * H, 128)              # halo window, 128-aligned
    L_ext = (n_tiles - 1) * TL + Wbuf

    # Channel pad + zero halo pad; all reflection handling is done in-kernel.
    xp = jnp.pad(x, ((0, 0), (0, Cp - C), (0, 0)))
    x_ext = jnp.pad(xp, ((0, 0), (0, 0), (H, L_ext - H - L)))

    kernel = _make_stack_kernel(tuple(dilations), Cp, TL, Wbuf, H, L, n_tiles)

    # Advisory cost estimate for the XLA scheduler.
    flops = 2 * nb * 10 * Cp * Cp * B * L_pad
    bytes_accessed = (B * Cp * L_ext * 4 + B * Cp * L_pad * 4
                      + int(wcat.size) * 2 + int(w2.size) * 2)
    cost = pl.CostEstimate(flops=int(flops),
                           transcendentals=int(2 * nb * Cp * B * L_pad),
                           bytes_accessed=int(bytes_accessed))

    # VMEM budget: weights (resident) + window buffer + in-flight intermediates.
    weight_bytes = (int(wcat.size + w2.size) * 2
                    + int(b_ab.size + b_sk.size + b2.size) * 4)
    act_bytes = Cp * Wbuf * 4 * 2 + 3 * Cp * Wbuf * (2 + 4 + 4) + Cp * TL * 4 * 2
    vmem_limit = int(min(64 * 1024 * 1024,
                         max(32 * 1024 * 1024, 2 * (weight_bytes + act_bytes))))

    out = pl.pallas_call(
        kernel,
        out_shape=jax.ShapeDtypeStruct((B, Cp, L_pad), jnp.float32),
        grid=(B, n_tiles),
        in_specs=[
            pl.BlockSpec(memory_space=pl.ANY),                  # x: manual halo DMA
            pl.BlockSpec(wcat.shape, lambda b, j: (0, 0, 0)),   # VMEM-resident
            pl.BlockSpec(w2.shape, lambda b, j: (0, 0, 0)),
            pl.BlockSpec(b_ab.shape, lambda b, j: (0, 0, 0)),
            pl.BlockSpec(b_sk.shape, lambda b, j: (0, 0, 0)),
            pl.BlockSpec(b2.shape, lambda b, j: (0, 0, 0)),
        ],
        out_specs=pl.BlockSpec((1, Cp, TL), lambda b, j: (b, 0, j)),
        scratch_shapes=[pltpu.VMEM((Cp, Wbuf), jnp.float32),
                        pltpu.SemaphoreType.DMA],
        compiler_params=pltpu.CompilerParams(
            dimension_semantics=("parallel", "parallel"),
            vmem_limit_bytes=vmem_limit),
        cost_estimate=cost,
    )(x_ext, wcat, w2, b_ab, b_sk, b2)

    return out[:, :C, :L]


# --------------------------------------------------------------------------- #
# Parameter init (matches wn_convnx: normal(0, 0.02) weights, zero bias,
# weight_norm with g initialized to ||v||).
# --------------------------------------------------------------------------- #
def init_block_params(key, channels):
    C = channels
    k1, k2, k3 = jax.random.split(key, 3)

    def make(k, shape):
        v = 0.02 * jax.random.normal(k, shape, jnp.float32)
        g = jnp.sqrt(jnp.sum(v * v, axis=(1, 2), keepdims=True))
        return v, g

    skip_v, skip_g = make(k1, (C, C, 1))
    c1_v, c1_g = make(k2, (2 * C, C, 3))
    c2_v, c2_g = make(k3, (C, C, 1))
    return dict(skip_v=skip_v, skip_g=skip_g, skip_b=jnp.zeros((C,), jnp.float32),
                c1_v=c1_v, c1_g=c1_g, c1_b=jnp.zeros((2 * C,), jnp.float32),
                c2_v=c2_v, c2_g=c2_g, c2_b=jnp.zeros((C,), jnp.float32))


# --------------------------------------------------------------------------- #
# Pure-JAX reference (mirrors the PyTorch module).
# --------------------------------------------------------------------------- #
def _ref_block(x, p, d):
    w_skip = _weight_norm(p['skip_v'], p['skip_g'])
    w1 = _weight_norm(p['c1_v'], p['c1_g'])
    w2 = _weight_norm(p['c2_v'], p['c2_g'])
    dn = ('NCH', 'OIH', 'NCH')
    skip = jax.lax.conv_general_dilated(
        x, w_skip, (1,), 'VALID', dimension_numbers=dn) + p['skip_b'][None, :, None]
    xp = jnp.pad(x, ((0, 0), (0, 0), (d, d)), mode='reflect')
    h = jax.lax.conv_general_dilated(
        xp, w1, (1,), 'VALID', rhs_dilation=(d,),
        dimension_numbers=dn) + p['c1_b'][None, :, None]
    C = x.shape[1]
    g = jnp.tanh(h[:, :C]) * jax.nn.sigmoid(h[:, C:])
    out = jax.lax.conv_general_dilated(
        g, w2, (1,), 'VALID', dimension_numbers=dn) + p['c2_b'][None, :, None]
    return out + skip


def _ref_stack(x, params):
    for i, p in enumerate(params):
        x = _ref_block(x, p, 3 ** i)
    return x


# --------------------------------------------------------------------------- #
if __name__ == "__main__":
    B, C, L = 2, 4, 16          # batch, channels, sequence length
    hidden_layers = 3           # dilations 1, 3, 9 (< L, as ReflectionPad requires)

    key = jax.random.PRNGKey(0)
    key, xkey = jax.random.split(key)
    x = jax.random.normal(xkey, (B, C, L), jnp.float32)

    block_keys = jax.random.split(key, hidden_layers)
    params = [init_block_params(block_keys[i], C) for i in range(hidden_layers)]

    # Pack / pad / cast weights once (hoisted out of the forward path).
    packed = pack_stack_params(params, C)

    fwd = jax.jit(residual_stack_forward)
    out = jax.block_until_ready(fwd(x, packed))

    ref = _ref_stack(x, params)
    assert out.shape == (B, C, L)
    max_err = float(jnp.max(jnp.abs(out - ref)))
    assert jnp.allclose(out, ref, atol=2e-3, rtol=2e-2), \
        f"mismatch vs reference (max abs err {max_err})"

    print("KERNEL_OK")
</pallas_src>

<mosaic_0001>
module attributes {stable_mosaic.version = 11 : i64} {
  func.func @kernel(%arg0: i32, %arg1: i32, %arg2: memref<2x8x256xf32, #tpu.memory_space<any>>, %arg3: memref<3x24x24xbf16, #tpu.memory_space<vmem>>, %arg4: memref<3x8x8xbf16, #tpu.memory_space<vmem>>, %arg5: memref<3x16x1xf32, #tpu.memory_space<vmem>>, %arg6: memref<3x8x1xf32, #tpu.memory_space<vmem>>, %arg7: memref<3x8x1xf32, #tpu.memory_space<vmem>>, %arg8: memref<1x8x128xf32, #tpu.memory_space<vmem>>, %arg9: memref<8x256xf32, #tpu.memory_space<vmem>>, %arg10: memref<!tpu.dma_semaphore, #tpu.memory_space<semaphore_mem>>) attributes {dimension_semantics = [#tpu.dimension_semantics<parallel>, #tpu.dimension_semantics<parallel>], iteration_bounds = array<i64: 2, 1>, scalar_prefetch = 0 : i64, scratch_operands = 2 : i64, tpu.core_type = #tpu.core_type<tc>, window_params = [{}, {pipeline_mode = #tpu.pipeline_mode<synchronous>, transform_indices = @transform_1, window_bounds = array<i64: 3, 24, 24>}, {pipeline_mode = #tpu.pipeline_mode<synchronous>, transform_indices = @transform_2, window_bounds = array<i64: 3, 8, 8>}, {pipeline_mode = #tpu.pipeline_mode<synchronous>, transform_indices = @transform_3, window_bounds = array<i64: 3, 16, 1>}, {pipeline_mode = #tpu.pipeline_mode<synchronous>, transform_indices = @transform_4, window_bounds = array<i64: 3, 8, 1>}, {pipeline_mode = #tpu.pipeline_mode<synchronous>, transform_indices = @transform_5, window_bounds = array<i64: 3, 8, 1>}, {transform_indices = @transform_6, window_bounds = array<i64: 1, 8, 128>}]} {
    %c128_i32 = arith.constant 128 : i32
    %0 = arith.muli %arg1, %c128_i32 : i32
    %1 = tpu.assume_multiple %0, 128 : i32
    %c0_i32 = arith.constant 0 : i32
    %2 = tpu.memref_slice %arg2[%arg0, %c0_i32, %1] : memref<2x8x256xf32, #tpu.memory_space<any>> -> memref<1x8x256xf32, #tpu.memory_space<any>>
    %3 = tpu.memref_squeeze %2 : memref<1x8x256xf32, #tpu.memory_space<any>> -> memref<8x256xf32, #tpu.memory_space<any>>
    tpu.enqueue_dma source(%3 : memref<8x256xf32, #tpu.memory_space<any>>) target(%arg9 : memref<8x256xf32, #tpu.memory_space<vmem>>) target_semaphore(%arg10 : memref<!tpu.dma_semaphore, #tpu.memory_space<semaphore_mem>>)
    %c0_i32_0 = arith.constant 0 : i32
    %4 = tpu.memref_slice %arg2[%arg0, %c0_i32_0, %1] : memref<2x8x256xf32, #tpu.memory_space<any>> -> memref<1x8x256xf32, #tpu.memory_space<any>>
    %5 = tpu.memref_squeeze %4 : memref<1x8x256xf32, #tpu.memory_space<any>> -> memref<8x256xf32, #tpu.memory_space<any>>
    tpu.wait_dma2 semaphore(%arg10 : memref<!tpu.dma_semaphore, #tpu.memory_space<semaphore_mem>>) src(%5 : memref<8x256xf32, #tpu.memory_space<any>>) dst(%arg9 : memref<8x256xf32, #tpu.memory_space<vmem>>)
    %c0_i32_1 = arith.constant 0 : i32
    %6 = arith.cmpi eq, %arg1, %c0_i32_1 : i32
    %7 = arith.extui %6 : i1 to i32
    %c0_i32_2 = arith.constant 0 : i32
    %8 = arith.cmpi ne, %7, %c0_i32_2 : i32
    scf.if %8 {
      %c0_84 = arith.constant 0 : index
      %c14 = arith.constant 14 : index
      %137 = vector.load %arg9[%c0_84, %c14] : memref<8x256xf32, #tpu.memory_space<vmem>>, vector<8x1xf32>
      %c0_85 = arith.constant 0 : index
      %c12 = arith.constant 12 : index
      %138 = vector.load %arg9[%c0_85, %c12] : memref<8x256xf32, #tpu.memory_space<vmem>>, vector<8x1xf32>
      tpu.vector_store %arg9[%c0_85, %c12], %137 {strides = array<i32>} : memref<8x256xf32, #tpu.memory_space<vmem>>, vector<8x1xf32>,
    } else {
    }
    %c0_i32_3 = arith.constant 0 : i32
    %9 = arith.cmpi eq, %arg1, %c0_i32_3 : i32
    %10 = arith.extui %9 : i1 to i32
    %c0_i32_4 = arith.constant 0 : i32
    %11 = arith.cmpi ne, %10, %c0_i32_4 : i32
    scf.if %11 {
      %c0_84 = arith.constant 0 : index
      %c27 = arith.constant 27 : index
      %137 = vector.load %arg9[%c0_84, %c27] : memref<8x256xf32, #tpu.memory_space<vmem>>, vector<8x1xf32>
      %c0_85 = arith.constant 0 : index
      %c29 = arith.constant 29 : index
      %138 = vector.load %arg9[%c0_85, %c29] : memref<8x256xf32, #tpu.memory_space<vmem>>, vector<8x1xf32>
      tpu.vector_store %arg9[%c0_85, %c29], %137 {strides = array<i32>} : memref<8x256xf32, #tpu.memory_space<vmem>>, vector<8x1xf32>,
    } else {
    }
    %c0 = arith.constant 0 : index
    %c0_5 = arith.constant 0 : index
    %12 = vector.load %arg9[%c0, %c0_5] : memref<8x256xf32, #tpu.memory_space<vmem>>, vector<8x152xf32>
    %c0_6 = arith.constant 0 : index
    %c1 = arith.constant 1 : index
    %13 = vector.load %arg9[%c0_6, %c1] : memref<8x256xf32, #tpu.memory_space<vmem>>, vector<8x152xf32>
    %c0_7 = arith.constant 0 : index
    %c2 = arith.constant 2 : index
    %14 = vector.load %arg9[%c0_7, %c2] : memref<8x256xf32, #tpu.memory_space<vmem>>, vector<8x152xf32>
    %15 = tpu.concatenate %12, %13, %14 in 0 : vector<8x152xf32>, vector<8x152xf32>, vector<8x152xf32> -> vector<24x152xf32>
    %16 = arith.truncf %15 : vector<24x152xf32> to vector<24x152xbf16>
    %c0_8 = arith.constant 0 : index
    %c0_9 = arith.constant 0 : index
    %c0_10 = arith.constant 0 : index
    %17 = vector.load %arg3[%c0_8, %c0_9, %c0_10] : memref<3x24x24xbf16, #tpu.memory_space<vmem>>, vector<1x24x24xbf16>
    %18 = vector.shape_cast %17 : vector<1x24x24xbf16> to vector<24x24xbf16>
    %cst = arith.constant dense<0.000000e+00> : vector<24x152xf32>
    %19 = tpu.matmul %18, %16, %cst {dimension_numbers = #tpu.dot_dimension_numbers<[1], [0], [0], [1], [0, 0, 1, 1], [], []>} : vector<24x24xbf16>, vector<24x152xbf16>, vector<24x152xf32> -> vector<24x152xf32>
    %20 = vector.extract_strided_slice %19 {offsets = [0, 0], sizes = [16, 152], strides = [1, 1]} : vector<24x152xf32> to vector<16x152xf32>
    %c0_11 = arith.constant 0 : index
    %c0_12 = arith.constant 0 : index
    %c0_13 = arith.constant 0 : index
    %21 = vector.load %arg5[%c0_11, %c0_12, %c0_13] : memref<3x16x1xf32, #tpu.memory_space<vmem>>, vector<1x16x1xf32>
    %22 = vector.shape_cast %21 : vector<1x16x1xf32> to vector<16x1xf32>
    %23 = vector.broadcast %22 : vector<16x1xf32> to vector<16x152xf32>
    %24 = arith.addf %20, %23 : vector<16x152xf32>
    %25 = vector.extract_strided_slice %19 {offsets = [16, 0], sizes = [8, 152], strides = [1, 1]} : vector<24x152xf32> to vector<8x152xf32>
    %c0_14 = arith.constant 0 : index
    %c0_15 = arith.constant 0 : index
    %c0_16 = arith.constant 0 : index
    %26 = vector.load %arg6[%c0_14, %c0_15, %c0_16] : memref<3x8x1xf32, #tpu.memory_space<vmem>>, vector<1x8x1xf32>
    %27 = vector.shape_cast %26 : vector<1x8x1xf32> to vector<8x1xf32>
    %28 = vector.broadcast %27 : vector<8x1xf32> to vector<8x152xf32>
    %29 = arith.addf %25, %28 : vector<8x152xf32>
    %30 = vector.extract_strided_slice %24 {offsets = [0, 0], sizes = [8, 152], strides = [1, 1]} : vector<16x152xf32> to vector<8x152xf32>
    %31 = math.tanh %30 : vector<8x152xf32>
    %32 = vector.extract_strided_slice %24 {offsets = [8, 0], sizes = [8, 152], strides = [1, 1]} : vector<16x152xf32> to vector<8x152xf32>
    %33 = arith.negf %32 : vector<8x152xf32>
    %34 = math.exp %33 : vector<8x152xf32>
    %cst_17 = arith.constant 1.000000e+00 : f32
    %35 = vector.broadcast %cst_17 : f32 to vector<8x152xf32>
    %36 = arith.addf %35, %34 : vector<8x152xf32>
    %37 = arith.divf %35, %36 : vector<8x152xf32>
    %38 = arith.mulf %31, %37 : vector<8x152xf32>
    %c0_18 = arith.constant 0 : index
    %c0_19 = arith.constant 0 : index
    %c0_20 = arith.constant 0 : index
    %39 = vector.load %arg4[%c0_18, %c0_19, %c0_20] : memref<3x8x8xbf16, #tpu.memory_space<vmem>>, vector<1x8x8xbf16>
    %40 = vector.shape_cast %39 : vector<1x8x8xbf16> to vector<8x8xbf16>
    %41 = arith.truncf %38 : vector<8x152xf32> to vector<8x152xbf16>
    %cst_21 = arith.constant dense<0.000000e+00> : vector<8x152xf32>
    %42 = tpu.matmul %40, %41, %cst_21 {dimension_numbers = #tpu.dot_dimension_numbers<[1], [0], [0], [1], [0, 0, 1, 1], [], []>} : vector<8x8xbf16>, vector<8x152xbf16>, vector<8x152xf32> -> vector<8x152xf32>
    %c0_22 = arith.constant 0 : index
    %c0_23 = arith.constant 0 : index
    %c0_24 = arith.constant 0 : index
    %43 = vector.load %arg7[%c0_22, %c0_23, %c0_24] : memref<3x8x1xf32, #tpu.memory_space<vmem>>, vector<1x8x1xf32>
    %44 = vector.shape_cast %43 : vector<1x8x1xf32> to vector<8x1xf32>
    %45 = vector.broadcast %44 : vector<8x1xf32> to vector<8x152xf32>
    %46 = arith.addf %42, %45 : vector<8x152xf32>
    %47 = arith.addf %46, %29 : vector<8x152xf32>
    %c0_25 = arith.constant 0 : index
    %c1_26 = arith.constant 1 : index
    %48 = vector.load %arg9[%c0_25, %c1_26] : memref<8x256xf32, #tpu.memory_space<vmem>>, vector<8x152xf32>
    tpu.vector_store %arg9[%c0_25, %c1_26], %47 {strides = array<i32>} : memref<8x256xf32, #tpu.memory_space<vmem>>, vector<8x152xf32>,
    %c0_i32_27 = arith.constant 0 : i32
    %49 = arith.cmpi eq, %arg1, %c0_i32_27 : i32
    %50 = arith.extui %49 : i1 to i32
    %c0_i32_28 = arith.constant 0 : i32
    %51 = arith.cmpi ne, %50, %c0_i32_28 : i32
    scf.if %51 {
      %c0_84 = arith.constant 0 : index
      %c14 = arith.constant 14 : index
      %137 = vector.load %arg9[%c0_84, %c14] : memref<8x256xf32, #tpu.memory_space<vmem>>, vector<8x1xf32>
      %c0_85 = arith.constant 0 : index
      %c12 = arith.constant 12 : index
      %138 = vector.load %arg9[%c0_85, %c12] : memref<8x256xf32, #tpu.memory_space<vmem>>, vector<8x1xf32>
      tpu.vector_store %arg9[%c0_85, %c12], %137 {strides = array<i32>} : memref<8x256xf32, #tpu.memory_space<vmem>>, vector<8x1xf32>,
      %c0_86 = arith.constant 0 : index
      %c15 = arith.constant 15 : index
      %139 = vector.load %arg9[%c0_86, %c15] : memref<8x256xf32, #tpu.memory_space<vmem>>, vector<8x1xf32>
      %c0_87 = arith.constant 0 : index
      %c11 = arith.constant 11 : index
      %140 = vector.load %arg9[%c0_87, %c11] : memref<8x256xf32, #tpu.memory_space<vmem>>, vector<8x1xf32>
      tpu.vector_store %arg9[%c0_87, %c11], %139 {strides = array<i32>} : memref<8x256xf32, #tpu.memory_space<vmem>>, vector<8x1xf32>,
      %c0_88 = arith.constant 0 : index
      %c16 = arith.constant 16 : index
      %141 = vector.load %arg9[%c0_88, %c16] : memref<8x256xf32, #tpu.memory_space<vmem>>, vector<8x1xf32>
      %c0_89 = arith.constant 0 : index
      %c10 = arith.constant 10 : index
      %142 = vector.load %arg9[%c0_89, %c10] : memref<8x256xf32, #tpu.memory_space<vmem>>, vector<8x1xf32>
      tpu.vector_store %arg9[%c0_89, %c10], %141 {strides = array<i32>} : memref<8x256xf32, #tpu.memory_space<vmem>>, vector<8x1xf32>,
    } else {
    }
    %c0_i32_29 = arith.constant 0 : i32
    %52 = arith.cmpi eq, %arg1, %c0_i32_29 : i32
    %53 = arith.extui %52 : i1 to i32
    %c0_i32_30 = arith.constant 0 : i32
    %54 = arith.cmpi ne, %53, %c0_i32_30 : i32
    scf.if %54 {
      %c0_84 = arith.constant 0 : index
      %c27 = arith.constant 27 : index
      %137 = vector.load %arg9[%c0_84, %c27] : memref<8x256xf32, #tpu.memory_space<vmem>>, vector<8x1xf32>
      %c0_85 = arith.constant 0 : index
      %c29 = arith.constant 29 : index
      %138 = vector.load %arg9[%c0_85, %c29] : memref<8x256xf32, #tpu.memory_space<vmem>>, vector<8x1xf32>
      tpu.vector_store %arg9[%c0_85, %c29], %137 {strides = array<i32>} : memref<8x256xf32, #tpu.memory_space<vmem>>, vector<8x1xf32>,
      %c0_86 = arith.constant 0 : index
      %c26 = arith.constant 26 : index
      %139 = vector.load %arg9[%c0_86, %c26] : memref<8x256xf32, #tpu.memory_space<vmem>>, vector<8x1xf32>
      %c0_87 = arith.constant 0 : index
      %c30 = arith.constant 30 : index
      %140 = vector.load %arg9[%c0_87, %c30] : memref<8x256xf32, #tpu.memory_space<vmem>>, vector<8x1xf32>
      tpu.vector_store %arg9[%c0_87, %c30], %139 {strides = array<i32>} : memref<8x256xf32, #tpu.memory_space<vmem>>, vector<8x1xf32>,
      %c0_88 = arith.constant 0 : index
      %c25 = arith.constant 25 : index
      %141 = vector.load %arg9[%c0_88, %c25] : memref<8x256xf32, #tpu.memory_space<vmem>>, vector<8x1xf32>
      %c0_89 = arith.constant 0 : index
      %c31 = arith.constant 31 : index
      %142 = vector.load %arg9[%c0_89, %c31] : memref<8x256xf32, #tpu.memory_space<vmem>>, vector<8x1xf32>
      tpu.vector_store %arg9[%c0_89, %c31], %141 {strides = array<i32>} : memref<8x256xf32, #tpu.memory_space<vmem>>, vector<8x1xf32>,
    } else {
    }
    %c0_31 = arith.constant 0 : index
    %c1_32 = arith.constant 1 : index
    %55 = vector.load %arg9[%c0_31, %c1_32] : memref<8x256xf32, #tpu.memory_space<vmem>>, vector<8x146xf32>
    %c0_33 = arith.constant 0 : index
    %c4 = arith.constant 4 : index
    %56 = vector.load %arg9[%c0_33, %c4] : memref<8x256xf32, #tpu.memory_space<vmem>>, vector<8x146xf32>
    %c0_34 = arith.constant 0 : index
    %c7 = arith.constant 7 : index
    %57 = vector.load %arg9[%c0_34, %c7] : memref<8x256xf32, #tpu.memory_space<vmem>>, vector<8x146xf32>
    %58 = tpu.concatenate %55, %56, %57 in 0 : vector<8x146xf32>, vector<8x146xf32>, vector<8x146xf32> -> vector<24x146xf32>
    %59 = arith.truncf %58 : vector<24x146xf32> to vector<24x146xbf16>
    %c1_35 = arith.constant 1 : index
    %c0_36 = arith.constant 0 : index
    %c0_37 = arith.constant 0 : index
    %60 = vector.load %arg3[%c1_35, %c0_36, %c0_37] : memref<3x24x24xbf16, #tpu.memory_space<vmem>>, vector<1x24x24xbf16>
    %61 = vector.shape_cast %60 : vector<1x24x24xbf16> to vector<24x24xbf16>
    %cst_38 = arith.constant dense<0.000000e+00> : vector<24x146xf32>
    %62 = tpu.matmul %61, %59, %cst_38 {dimension_numbers = #tpu.dot_dimension_numbers<[1], [0], [0], [1], [0, 0, 1, 1], [], []>} : vector<24x24xbf16>, vector<24x146xbf16>, vector<24x146xf32> -> vector<24x146xf32>
    %63 = vector.extract_strided_slice %62 {offsets = [0, 0], sizes = [16, 146], strides = [1, 1]} : vector<24x146xf32> to vector<16x146xf32>
    %c1_39 = arith.constant 1 : index
    %c0_40 = arith.constant 0 : index
    %c0_41 = arith.constant 0 : index
    %64 = vector.load %arg5[%c1_39, %c0_40, %c0_41] : memref<3x16x1xf32, #tpu.memory_space<vmem>>, vector<1x16x1xf32>
    %65 = vector.shape_cast %64 : vector<1x16x1xf32> to vector<16x1xf32>
    %66 = vector.broadcast %65 : vector<16x1xf32> to vector<16x146xf32>
    %67 = arith.addf %63, %66 : vector<16x146xf32>
    %68 = vector.extract_strided_slice %62 {offsets = [16, 0], sizes = [8, 146], strides = [1, 1]} : vector<24x146xf32> to vector<8x146xf32>
    %c1_42 = arith.constant 1 : index
    %c0_43 = arith.constant 0 : index
    %c0_44 = arith.constant 0 : index
    %69 = vector.load %arg6[%c1_42, %c0_43, %c0_44] : memref<3x8x1xf32, #tpu.memory_space<vmem>>, vector<1x8x1xf32>
    %70 = vector.shape_cast %69 : vector<1x8x1xf32> to vector<8x1xf32>
    %71 = vector.broadcast %70 : vector<8x1xf32> to vector<8x146xf32>
    %72 = arith.addf %68, %71 : vector<8x146xf32>
    %73 = vector.extract_strided_slice %67 {offsets = [0, 0], sizes = [8, 146], strides = [1, 1]} : vector<16x146xf32> to vector<8x146xf32>
    %74 = math.tanh %73 : vector<8x146xf32>
    %75 = vector.extract_strided_slice %67 {offsets = [8, 0], sizes = [8, 146], strides = [1, 1]} : vector<16x146xf32> to vector<8x146xf32>
    %76 = arith.negf %75 : vector<8x146xf32>
    %77 = math.exp %76 : vector<8x146xf32>
    %cst_45 = arith.constant 1.000000e+00 : f32
    %78 = vector.broadcast %cst_45 : f32 to vector<8x146xf32>
    %79 = arith.addf %78, %77 : vector<8x146xf32>
    %80 = arith.divf %78, %79 : vector<8x146xf32>
    %81 = arith.mulf %74, %80 : vector<8x146xf32>
    %c1_46 = arith.constant 1 : index
    %c0_47 = arith.constant 0 : index
    %c0_48 = arith.constant 0 : index
    %82 = vector.load %arg4[%c1_46, %c0_47, %c0_48] : memref<3x8x8xbf16, #tpu.memory_space<vmem>>, vector<1x8x8xbf16>
    %83 = vector.shape_cast %82 : vector<1x8x8xbf16> to vector<8x8xbf16>
    %84 = arith.truncf %81 : vector<8x146xf32> to vector<8x146xbf16>
    %cst_49 = arith.constant dense<0.000000e+00> : vector<8x146xf32>
    %85 = tpu.matmul %83, %84, %cst_49 {dimension_numbers = #tpu.dot_dimension_numbers<[1], [0], [0], [1], [0, 0, 1, 1], [], []>} : vector<8x8xbf16>, vector<8x146xbf16>, vector<8x146xf32> -> vector<8x146xf32>
    %c1_50 = arith.constant 1 : index
    %c0_51 = arith.constant 0 : index
    %c0_52 = arith.constant 0 : index
    %86 = vector.load %arg7[%c1_50, %c0_51, %c0_52] : memref<3x8x1xf32, #tpu.memory_space<vmem>>, vector<1x8x1xf32>
    %87 = vector.shape_cast %86 : vector<1x8x1xf32> to vector<8x1xf32>
    %88 = vector.broadcast %87 : vector<8x1xf32> to vector<8x146xf32>
    %89 = arith.addf %85, %88 : vector<8x146xf32>
    %90 = arith.addf %89, %72 : vector<8x146xf32>
    %c0_53 = arith.constant 0 : index
    %c4_54 = arith.constant 4 : index
    %91 = vector.load %arg9[%c0_53, %c4_54] : memref<8x256xf32, #tpu.memory_space<vmem>>, vector<8x146xf32>
    tpu.vector_store %arg9[%c0_53, %c4_54], %90 {strides = array<i32>} : memref<8x256xf32, #tpu.memory_space<vmem>>, vector<8x146xf32>,
    %c0_i32_55 = arith.constant 0 : i32
    %92 = arith.cmpi eq, %arg1, %c0_i32_55 : i32
    %93 = arith.extui %92 : i1 to i32
    %c0_i32_56 = arith.constant 0 : i32
    %94 = arith.cmpi ne, %93, %c0_i32_56 : i32
    scf.if %94 {
      %c0_84 = arith.constant 0 : index
      %c14 = arith.constant 14 : index
      %137 = vector.load %arg9[%c0_84, %c14] : memref<8x256xf32, #tpu.memory_space<vmem>>, vector<8x1xf32>
      %c0_85 = arith.constant 0 : index
      %c12 = arith.constant 12 : index
      %138 = vector.load %arg9[%c0_85, %c12] : memref<8x256xf32, #tpu.memory_space<vmem>>, vector<8x1xf32>
      tpu.vector_store %arg9[%c0_85, %c12], %137 {strides = array<i32>} : memref<8x256xf32, #tpu.memory_space<vmem>>, vector<8x1xf32>,
      %c0_86 = arith.constant 0 : index
      %c15 = arith.constant 15 : index
      %139 = vector.load %arg9[%c0_86, %c15] : memref<8x256xf32, #tpu.memory_space<vmem>>, vector<8x1xf32>
      %c0_87 = arith.constant 0 : index
      %c11 = arith.constant 11 : index
      %140 = vector.load %arg9[%c0_87, %c11] : memref<8x256xf32, #tpu.memory_space<vmem>>, vector<8x1xf32>
      tpu.vector_store %arg9[%c0_87, %c11], %139 {strides = array<i32>} : memref<8x256xf32, #tpu.memory_space<vmem>>, vector<8x1xf32>,
      %c0_88 = arith.constant 0 : index
      %c16 = arith.constant 16 : index
      %141 = vector.load %arg9[%c0_88, %c16] : memref<8x256xf32, #tpu.memory_space<vmem>>, vector<8x1xf32>
      %c0_89 = arith.constant 0 : index
      %c10 = arith.constant 10 : index
      %142 = vector.load %arg9[%c0_89, %c10] : memref<8x256xf32, #tpu.memory_space<vmem>>, vector<8x1xf32>
      tpu.vector_store %arg9[%c0_89, %c10], %141 {strides = array<i32>} : memref<8x256xf32, #tpu.memory_space<vmem>>, vector<8x1xf32>,
      %c0_90 = arith.constant 0 : index
      %c17 = arith.constant 17 : index
      %143 = vector.load %arg9[%c0_90, %c17] : memref<8x256xf32, #tpu.memory_space<vmem>>, vector<8x1xf32>
      %c0_91 = arith.constant 0 : index
      %c9 = arith.constant 9 : index
      %144 = vector.load %arg9[%c0_91, %c9] : memref<8x256xf32, #tpu.memory_space<vmem>>, vector<8x1xf32>
      tpu.vector_store %arg9[%c0_91, %c9], %143 {strides = array<i32>} : memref<8x256xf32, #tpu.memory_space<vmem>>, vector<8x1xf32>,
      %c0_92 = arith.constant 0 : index
      %c18 = arith.constant 18 : index
      %145 = vector.load %arg9[%c0_92, %c18] : memref<8x256xf32, #tpu.memory_space<vmem>>, vector<8x1xf32>
      %c0_93 = arith.constant 0 : index
      %c8 = arith.constant 8 : index
      %146 = vector.load %arg9[%c0_93, %c8] : memref<8x256xf32, #tpu.memory_space<vmem>>, vector<8x1xf32>
      tpu.vector_store %arg9[%c0_93, %c8], %145 {strides = array<i32>} : memref<8x256xf32, #tpu.memory_space<vmem>>, vector<8x1xf32>,
      %c0_94 = arith.constant 0 : index
      %c19 = arith.constant 19 : index
      %147 = vector.load %arg9[%c0_94, %c19] : memref<8x256xf32, #tpu.memory_space<vmem>>, vector<8x1xf32>
      %c0_95 = arith.constant 0 : index
      %c7_96 = arith.constant 7 : index
      %148 = vector.load %arg9[%c0_95, %c7_96] : memref<8x256xf32, #tpu.memory_space<vmem>>, vector<8x1xf32>
      tpu.vector_store %arg9[%c0_95, %c7_96], %147 {strides = array<i32>} : memref<8x256xf32, #tpu.memory_space<vmem>>, vector<8x1xf32>,
      %c0_97 = arith.constant 0 : index
      %c20 = arith.constant 20 : index
      %149 = vector.load %arg9[%c0_97, %c20] : memref<8x256xf32, #tpu.memory_space<vmem>>, vector<8x1xf32>
      %c0_98 = arith.constant 0 : index
      %c6 = arith.constant 6 : index
      %150 = vector.load %arg9[%c0_98, %c6] : memref<8x256xf32, #tpu.memory_space<vmem>>, vector<8x1xf32>
      tpu.vector_store %arg9[%c0_98, %c6], %149 {strides = array<i32>} : memref<8x256xf32, #tpu.memory_space<vmem>>, vector<8x1xf32>,
      %c0_99 = arith.constant 0 : index
      %c21 = arith.constant 21 : index
      %151 = vector.load %arg9[%c0_99, %c21] : memref<8x256xf32, #tpu.memory_space<vmem>>, vector<8x1xf32>
      %c0_100 = arith.constant 0 : index
      %c5 = arith.constant 5 : index
      %152 = vector.load %arg9[%c0_100, %c5] : memref<8x256xf32, #tpu.memory_space<vmem>>, vector<8x1xf32>
      tpu.vector_store %arg9[%c0_100, %c5], %151 {strides = array<i32>} : memref<8x256xf32, #tpu.memory_space<vmem>>, vector<8x1xf32>,
      %c0_101 = arith.constant 0 : index
      %c22_102 = arith.constant 22 : index
      %153 = vector.load %arg9[%c0_101, %c22_102] : memref<8x256xf32, #tpu.memory_space<vmem>>, vector<8x1xf32>
      %c0_103 = arith.constant 0 : index
      %c4_104 = arith.constant 4 : index
      %154 = vector.load %arg9[%c0_103, %c4_104] : memref<8x256xf32, #tpu.memory_space<vmem>>, vector<8x1xf32>
      tpu.vector_store %arg9[%c0_103, %c4_104], %153 {strides = array<i32>} : memref<8x256xf32, #tpu.memory_space<vmem>>, vector<8x1xf32>,
    } else {
    }
    %c0_i32_57 = arith.constant 0 : i32
    %95 = arith.cmpi eq, %arg1, %c0_i32_57 : i32
    %96 = arith.extui %95 : i1 to i32
    %c0_i32_58 = arith.constant 0 : i32
    %97 = arith.cmpi ne, %96, %c0_i32_58 : i32
    scf.if %97 {
      %c0_84 = arith.constant 0 : index
      %c27 = arith.constant 27 : index
      %137 = vector.load %arg9[%c0_84, %c27] : memref<8x256xf32, #tpu.memory_space<vmem>>, vector<8x1xf32>
      %c0_85 = arith.constant 0 : index
      %c29 = arith.constant 29 : index
      %138 = vector.load %arg9[%c0_85, %c29] : memref<8x256xf32, #tpu.memory_space<vmem>>, vector<8x1xf32>
      tpu.vector_store %arg9[%c0_85, %c29], %137 {strides = array<i32>} : memref<8x256xf32, #tpu.memory_space<vmem>>, vector<8x1xf32>,
      %c0_86 = arith.constant 0 : index
      %c26 = arith.constant 26 : index
      %139 = vector.load %arg9[%c0_86, %c26] : memref<8x256xf32, #tpu.memory_space<vmem>>, vector<8x1xf32>
      %c0_87 = arith.constant 0 : index
      %c30 = arith.constant 30 : index
      %140 = vector.load %arg9[%c0_87, %c30] : memref<8x256xf32, #tpu.memory_space<vmem>>, vector<8x1xf32>
      tpu.vector_store %arg9[%c0_87, %c30], %139 {strides = array<i32>} : memref<8x256xf32, #tpu.memory_space<vmem>>, vector<8x1xf32>,
      %c0_88 = arith.constant 0 : index
      %c25 = arith.constant 25 : index
      %141 = vector.load %arg9[%c0_88, %c25] : memref<8x256xf32, #tpu.memory_space<vmem>>, vector<8x1xf32>
      %c0_89 = arith.constant 0 : index
      %c31 = arith.constant 31 : index
      %142 = vector.load %arg9[%c0_89, %c31] : memref<8x256xf32, #tpu.memory_space<vmem>>, vector<8x1xf32>
      tpu.vector_store %arg9[%c0_89, %c31], %141 {strides = array<i32>} : memref<8x256xf32, #tpu.memory_space<vmem>>, vector<8x1xf32>,
      %c0_90 = arith.constant 0 : index
      %c24 = arith.constant 24 : index
      %143 = vector.load %arg9[%c0_90, %c24] : memref<8x256xf32, #tpu.memory_space<vmem>>, vector<8x1xf32>
      %c0_91 = arith.constant 0 : index
      %c32 = arith.constant 32 : index
      %144 = vector.load %arg9[%c0_91, %c32] : memref<8x256xf32, #tpu.memory_space<vmem>>, vector<8x1xf32>
      tpu.vector_store %arg9[%c0_91, %c32], %143 {strides = array<i32>} : memref<8x256xf32, #tpu.memory_space<vmem>>, vector<8x1xf32>,
      %c0_92 = arith.constant 0 : index
      %c23 = arith.constant 23 : index
      %145 = vector.load %arg9[%c0_92, %c23] : memref<8x256xf32, #tpu.memory_space<vmem>>, vector<8x1xf32>
      %c0_93 = arith.constant 0 : index
      %c33 = arith.constant 33 : index
      %146 = vector.load %arg9[%c0_93, %c33] : memref<8x256xf32, #tpu.memory_space<vmem>>, vector<8x1xf32>
      tpu.vector_store %arg9[%c0_93, %c33], %145 {strides = array<i32>} : memref<8x256xf32, #tpu.memory_space<vmem>>, vector<8x1xf32>,
      %c0_94 = arith.constant 0 : index
      %c22_95 = arith.constant 22 : index
      %147 = vector.load %arg9[%c0_94, %c22_95] : memref<8x256xf32, #tpu.memory_space<vmem>>, vector<8x1xf32>
      %c0_96 = arith.constant 0 : index
      %c34 = arith.constant 34 : index
      %148 = vector.load %arg9[%c0_96, %c34] : memref<8x256xf32, #tpu.memory_space<vmem>>, vector<8x1xf32>
      tpu.vector_store %arg9[%c0_96, %c34], %147 {strides = array<i32>} : memref<8x256xf32, #tpu.memory_space<vmem>>, vector<8x1xf32>,
      %c0_97 = arith.constant 0 : index
      %c21 = arith.constant 21 : index
      %149 = vector.load %arg9[%c0_97, %c21] : memref<8x256xf32, #tpu.memory_space<vmem>>, vector<8x1xf32>
      %c0_98 = arith.constant 0 : index
      %c35 = arith.constant 35 : index
      %150 = vector.load %arg9[%c0_98, %c35] : memref<8x256xf32, #tpu.memory_space<vmem>>, vector<8x1xf32>
      tpu.vector_store %arg9[%c0_98, %c35], %149 {strides = array<i32>} : memref<8x256xf32, #tpu.memory_space<vmem>>, vector<8x1xf32>,
      %c0_99 = arith.constant 0 : index
      %c20 = arith.constant 20 : index
      %151 = vector.load %arg9[%c0_99, %c20] : memref<8x256xf32, #tpu.memory_space<vmem>>, vector<8x1xf32>
      %c0_100 = arith.constant 0 : index
      %c36 = arith.constant 36 : index
      %152 = vector.load %arg9[%c0_100, %c36] : memref<8x256xf32, #tpu.memory_space<vmem>>, vector<8x1xf32>
      tpu.vector_store %arg9[%c0_100, %c36], %151 {strides = array<i32>} : memref<8x256xf32, #tpu.memory_space<vmem>>, vector<8x1xf32>,
      %c0_101 = arith.constant 0 : index
      %c19 = arith.constant 19 : index
      %153 = vector.load %arg9[%c0_101, %c19] : memref<8x256xf32, #tpu.memory_space<vmem>>, vector<8x1xf32>
      %c0_102 = arith.constant 0 : index
      %c37 = arith.constant 37 : index
      %154 = vector.load %arg9[%c0_102, %c37] : memref<8x256xf32, #tpu.memory_space<vmem>>, vector<8x1xf32>
      tpu.vector_store %arg9[%c0_102, %c37], %153 {strides = array<i32>} : memref<8x256xf32, #tpu.memory_space<vmem>>, vector<8x1xf32>,
    } else {
    }
    %c0_59 = arith.constant 0 : index
    %c4_60 = arith.constant 4 : index
    %98 = vector.load %arg9[%c0_59, %c4_60] : memref<8x256xf32, #tpu.memory_space<vmem>>, vector<8x128xf32>
    %c0_61 = arith.constant 0 : index
    %c13 = arith.constant 13 : index
    %99 = vector.load %arg9[%c0_61, %c13] : memref<8x256xf32, #tpu.memory_space<vmem>>, vector<8x128xf32>
    %c0_62 = arith.constant 0 : index
    %c22 = arith.constant 22 : index
    %100 = vector.load %arg9[%c0_62, %c22] : memref<8x256xf32, #tpu.memory_space<vmem>>, vector<8x128xf32>
    %101 = tpu.concatenate %98, %99, %100 in 0 : vector<8x128xf32>, vector<8x128xf32>, vector<8x128xf32> -> vector<24x128xf32>
    %102 = arith.truncf %101 : vector<24x128xf32> to vector<24x128xbf16>
    %c2_63 = arith.constant 2 : index
    %c0_64 = arith.constant 0 : index
    %c0_65 = arith.constant 0 : index
    %103 = vector.load %arg3[%c2_63, %c0_64, %c0_65] : memref<3x24x24xbf16, #tpu.memory_space<vmem>>, vector<1x24x24xbf16>
    %104 = vector.shape_cast %103 : vector<1x24x24xbf16> to vector<24x24xbf16>
    %cst_66 = arith.constant dense<0.000000e+00> : vector<24x128xf32>
    %105 = tpu.matmul %104, %102, %cst_66 {dimension_numbers = #tpu.dot_dimension_numbers<[1], [0], [0], [1], [0, 0, 1, 1], [], []>} : vector<24x24xbf16>, vector<24x128xbf16>, vector<24x128xf32> -> vector<24x128xf32>
    %106 = vector.extract_strided_slice %105 {offsets = [0, 0], sizes = [16, 128], strides = [1, 1]} : vector<24x128xf32> to vector<16x128xf32>
    %c2_67 = arith.constant 2 : index
    %c0_68 = arith.constant 0 : index
    %c0_69 = arith.constant 0 : index
    %107 = vector.load %arg5[%c2_67, %c0_68, %c0_69] : memref<3x16x1xf32, #tpu.memory_space<vmem>>, vector<1x16x1xf32>
    %108 = vector.shape_cast %107 : vector<1x16x1xf32> to vector<16x1xf32>
    %109 = vector.broadcast %108 : vector<16x1xf32> to vector<16x128xf32>
    %110 = arith.addf %106, %109 : vector<16x128xf32>
    %111 = vector.extract_strided_slice %105 {offsets = [16, 0], sizes = [8, 128], strides = [1, 1]} : vector<24x128xf32> to vector<8x128xf32>
    %c2_70 = arith.constant 2 : index
    %c0_71 = arith.constant 0 : index
    %c0_72 = arith.constant 0 : index
    %112 = vector.load %arg6[%c2_70, %c0_71, %c0_72] : memref<3x8x1xf32, #tpu.memory_space<vmem>>, vector<1x8x1xf32>
    %113 = vector.shape_cast %112 : vector<1x8x1xf32> to vector<8x1xf32>
    %114 = vector.broadcast %113 : vector<8x1xf32> to vector<8x128xf32>
    %115 = arith.addf %111, %114 : vector<8x128xf32>
    %116 = vector.extract_strided_slice %110 {offsets = [0, 0], sizes = [8, 128], strides = [1, 1]} : vector<16x128xf32> to vector<8x128xf32>
    %117 = math.tanh %116 : vector<8x128xf32>
    %118 = vector.extract_strided_slice %110 {offsets = [8, 0], sizes = [8, 128], strides = [1, 1]} : vector<16x128xf32> to vector<8x128xf32>
    %119 = arith.negf %118 : vector<8x128xf32>
    %120 = math.exp %119 : vector<8x128xf32>
    %cst_73 = arith.constant 1.000000e+00 : f32
    %121 = vector.broadcast %cst_73 : f32 to vector<8x128xf32>
    %122 = arith.addf %121, %120 : vector<8x128xf32>
    %123 = arith.divf %121, %122 : vector<8x128xf32>
    %124 = arith.mulf %117, %123 : vector<8x128xf32>
    %c2_74 = arith.constant 2 : index
    %c0_75 = arith.constant 0 : index
    %c0_76 = arith.constant 0 : index
    %125 = vector.load %arg4[%c2_74, %c0_75, %c0_76] : memref<3x8x8xbf16, #tpu.memory_space<vmem>>, vector<1x8x8xbf16>
    %126 = vector.shape_cast %125 : vector<1x8x8xbf16> to vector<8x8xbf16>
    %127 = arith.truncf %124 : vector<8x128xf32> to vector<8x128xbf16>
    %cst_77 = arith.constant dense<0.000000e+00> : vector<8x128xf32>
    %128 = tpu.matmul %126, %127, %cst_77 {dimension_numbers = #tpu.dot_dimension_numbers<[1], [0], [0], [1], [0, 0, 1, 1], [], []>} : vector<8x8xbf16>, vector<8x128xbf16>, vector<8x128xf32> -> vector<8x128xf32>
    %c2_78 = arith.constant 2 : index
    %c0_79 = arith.constant 0 : index
    %c0_80 = arith.constant 0 : index
    %129 = vector.load %arg7[%c2_78, %c0_79, %c0_80] : memref<3x8x1xf32, #tpu.memory_space<vmem>>, vector<1x8x1xf32>
    %130 = vector.shape_cast %129 : vector<1x8x1xf32> to vector<8x1xf32>
    %131 = vector.broadcast %130 : vector<8x1xf32> to vector<8x128xf32>
    %132 = arith.addf %128, %131 : vector<8x128xf32>
    %133 = arith.addf %132, %115 : vector<8x128xf32>
    %c0_81 = arith.constant 0 : index
    %c0_82 = arith.constant 0 : index
    %c0_83 = arith.constant 0 : index
    %134 = vector.load %arg8[%c0_81, %c0_82, %c0_83] : memref<1x8x128xf32, #tpu.memory_space<vmem>>, vector<1x8x128xf32>
    %135 = vector.shape_cast %134 : vector<1x8x128xf32> to vector<8x128xf32>
    %136 = vector.shape_cast %133 : vector<8x128xf32> to vector<1x8x128xf32>
    tpu.vector_store %arg8[%c0_81, %c0_82, %c0_83], %136 {strides = array<i32>} : memref<1x8x128xf32, #tpu.memory_space<vmem>>, vector<1x8x128xf32>,
    return
  }
  func.func @transform_1(%arg0: i32, %arg1: i32) -> (i32, i32, i32) {
    %c0_i32 = arith.constant 0 : i32
    %c0_i32_0 = arith.constant 0 : i32
    %c0_i32_1 = arith.constant 0 : i32
    %c0_i32_2 = arith.constant 0 : i32
    return %c0_i32, %c0_i32_0, %c0_i32_1 : i32, i32, i32
  }
  func.func @transform_2(%arg0: i32, %arg1: i32) -> (i32, i32, i32) {
    %c0_i32 = arith.constant 0 : i32
    %c0_i32_0 = arith.constant 0 : i32
    %c0_i32_1 = arith.constant 0 : i32
    %c0_i32_2 = arith.constant 0 : i32
    return %c0_i32, %c0_i32_0, %c0_i32_1 : i32, i32, i32
  }
  func.func @transform_3(%arg0: i32, %arg1: i32) -> (i32, i32, i32) {
    %c0_i32 = arith.constant 0 : i32
    %c0_i32_0 = arith.constant 0 : i32
    %c0_i32_1 = arith.constant 0 : i32
    %c0_i32_2 = arith.constant 0 : i32
    return %c0_i32, %c0_i32_0, %c0_i32_1 : i32, i32, i32
  }
  func.func @transform_4(%arg0: i32, %arg1: i32) -> (i32, i32, i32) {
    %c0_i32 = arith.constant 0 : i32
    %c0_i32_0 = arith.constant 0 : i32
    %c0_i32_1 = arith.constant 0 : i32
    %c0_i32_2 = arith.constant 0 : i32
    return %c0_i32, %c0_i32_0, %c0_i32_1 : i32, i32, i32
  }
  func.func @transform_5(%arg0: i32, %arg1: i32) -> (i32, i32, i32) {
    %c0_i32 = arith.constant 0 : i32
    %c0_i32_0 = arith.constant 0 : i32
    %c0_i32_1 = arith.constant 0 : i32
    %c0_i32_2 = arith.constant 0 : i32
    return %c0_i32, %c0_i32_0, %c0_i32_1 : i32, i32, i32
  }
  func.func @transform_6(%arg0: i32, %arg1: i32) -> (i32, i32, i32) {
    %c0_i32 = arith.constant 0 : i32
    %c0_i32_0 = arith.constant 0 : i32
    return %arg0, %c0_i32, %arg1 : i32, i32, i32
  }
}

</mosaic_0001>

<bundles_post_ra>
// kernel: residual_stack_forward.1
= control target key start
LH: loop header
LB: loop body
LE: loop exit
PB: predicated region body
PF: predicated region fallthrough
CT: control target
= control target key end

     0   :  { %s1474_s21 = smov 0   ;;  %s1476_s22 = smov 0   ;;  %s1654_s0 = inlined_call_operand.vmem [shape: f32[2,8,256], index: 0, kind: input, shape index: {}]   ;;  %s1655_s1 = inlined_call_operand.vmem [shape: bf16[3,24,24], index: 1, kind: input, shape index: {}]   ;;  %s1656_s2 = inlined_call_operand.vmem [shape: bf16[3,8,8], index: 2, kind: input, shape index: {}]   ;;  %s1657_s3 = inlined_call_operand.vmem [shape: f32[3,16,1], index: 3, kind: input, shape index: {}]   ;;  %s1658_s4 = inlined_call_operand.vmem [shape: f32[3,8,1], index: 4, kind: input, shape index: {}]   ;;  %s1659_s5 = inlined_call_operand.vmem [shape: f32[3,8,1], index: 5, kind: input, shape index: {}]   ;;  %s1660_s6 = inlined_call_operand.vmem [shape: f32[2,8,128], index: 6, kind: output, shape index: {}]  }
   0x1   :  { %s1478_s23 = smov 0  }
   0x2 LB: > { %s28_s24 = sadd.s32 1, %s1408_s22  ;;  %p1202_p0 = scmp.ge.s32.totalorder %s1412_s23, 1  ;;  %s1412_s23 = sphi %s1478_s23, %s16_s23   ;;  %s1408_s22 = sphi %s1476_s22, %s1662_s22   ;;  %s1404_s21 = sphi %s1474_s21, %s1661_s21  }
   0x3   : > { %p30_p1 = scmp.ge.s32.totalorder %s28_s24, 2  ;;  %p192_p2 = scmp.lt.s32.totalorder %s1412_s23, 3 }
   0x5   : > { %s1664_s24 = smov (%p30_p1, %s28_s24), 0  ;;  %p193_p3 = pnand %p1202_p0, %p192_p2 }
   0x6   : > { %p217_p4 = scmp.lt.s32.totalorder (!%p193_p3), %s1404_s21, 1  ;;  %s1249_s25 = sshll.u32 (!%p193_p3), %s1404_s21, 4 }
   0x7   : > { %196 = sbr.rel (%p193_p3) target bundleno = 5403 (0x151b), region = 40  ;;  %s231_s28 = scalar_lea.vmem (!%p193_p3), %s1654_s0, %s1249_s25 }
   0xc   : > { %s1666_s21 = smov (!%p217_p4, %s1404_s21), 1  ;;  %v265_v0 = vld [vmem:[%s231_s28] sm:$0xff]  ;;  %v267_v1 = vld [vmem:[%s231_s28 + $0x8] sm:$0xff] }
   0xd   : > { %266 = vst [vmem:[#allocation2] sm:$0xff] %v265_v0  ;;  %268 = vst [vmem:[#allocation2 + $0x8] sm:$0xff] %v267_v1  ;;  %s1203_s29 = sshll.u32 %s1666_s21, 3 }
   0xe   : > { %s1498_s8 = scalar_lea.vmem %s1660_s6, %s1203_s29 }
   0xf   : > { %276 = vsyncadd [#allocation3], 256 }
  0x10   : > { %1400 = dma.done.wait [#allocation3], 256 }
  0x11   : > { %1401 = vsyncadd [#allocation3], 4294967040  ;;  %s1414_s9 = smov 126   ;;  %vm290_vm0 = vcmask 105568   ;;  %s1415_s10 = smov 2   ;;  %vm297_vm1 = vcmask 244968  }
  0x12   : > { %v1416_v9 = vmov 0   ;;  %s1417_s11 = smov 127   ;;  %v399_v10 = vld [vmem:[%s1657_s3] sm:$0xff]  ;;  %v400_v11 = vld [vmem:[%s1657_s3 + $0x8] sm:$0xff]  ;;  %vm315_vm2 = vcmask 1031168   ;;  %vm341_vm3 = vcmask 1043456  }
  0x13   : > { %380 = vmatprep.mubr.bf16.mxu0 %v1416_v9  ;;  %1331 = vset.pattern.permute.xlu1 %v1416_v9  ;;  %v442_v12 = vld [vmem:[%s1659_s5] sm:$0xff]  ;;  %vm307_vm4 = vcmask 1039360   ;;  %vm334_vm5 = vcmask 195584   ;;  %v1353_v28 = vld [vmem:[%s1655_s1 + $0x8] ss:$0 sps:$4 sm:$0xff]   ;;  %vm448_vm6 = vcmask 64512  }
  0x14   : > { %v285_v2 = vld [vmem:[#allocation2] sm:$0xff]  ;;  %v300_v6 = vld [vmem:[#allocation2 + $0x8] sm:$0xff]  ;;  %1330 = vset.pattern.permute.xlu0 %v1416_v9  ;;  %490 = vmatprep.mubr.bf16.mxu1 %v1416_v9  ;;  %s1418_s29 = smov 1   ;;  %vm511_vm7 = vcmask 1047560   ;;  %s1419_s30 = smov 124   ;;  %vm530_vm8 = vcmask 97368  }
  0x15   : > { %287 = vrot.lane.b32.xlu0 %v285_v2, %s1414_s9  ;;  %v415_v13 = vld [vmem:[%s1658_s4] sm:$0xff]  ;;  %s1420_s7 = smov 122   ;;  %vm537_vm9 = vcmask 89168   ;;  %vm507_vm10 = vcmask 7168   ;;  %vm513_vm11 = vcmask 203776   ;;  %s1421_s12 = smov 4  }
  0x16   : > { %v1352_v27 = vld [vmem:[%s1655_s1] sm:$0xff]   ;;  %vm551_vm12 = vcmask 253168   ;;  %s1422_s13 = smov 6   ;;  %vm558_vm13 = vcmask 261368   ;;  %s1423_s14 = smov 125   ;;  %vm576_vm14 = vcmask 998400  }
  0x17   : > { %v439_v58 = vld [vmem:[%s1656_s2] sm:$0xf]  ;;  %vm568_vm15 = vcmask 1022976   ;;  %s1424_s15 = smov 120   ;;  %s1426_s16 = smov 116  }
  0x18   : > { %s1428_s17 = smov 112   ;;  %s1429_s18 = smov 110  }
  0x19   : > { %s1430_s19 = smov 8   ;;  %s1432_s20 = smov 12  }
  0x1a   : > { %s1434_s21 = smov 16   ;;  %s1435_s25 = smov 18  }
  0x87   : > { %v288_v3 = vpop.permute.xlu0 %287 }
  0x88   : > { %291 = vst.msk [vmem:[#allocation2] sm:$0xff] %vm290_vm0, %v288_v3 }
  0x8f   : > { %v292_v4 = vld [vmem:[#allocation2] sm:$0xff] }
  0x90   : > { %294 = vrot.lane.b32.xlu0 %v292_v4, %s1415_s10 }
  0x94   : > { %408 = vperm.xlu0 %1330, %v400_v11  }
  0x98   : > { %445 = vperm.xlu0 %1330, %v442_v12  }
 0x102   : > { %v295_v5 = vpop.permute.xlu0 %294 }
 0x103   : > { %298 = vst.msk [vmem:[#allocation2] sm:$0xff] %vm297_vm1, %v295_v5 }
 0x10a   : > { %v299_v7 = vld [vmem:[#allocation2] sm:$0xff] }
 0x10b   : > { %v1320_v8 = vpack.i.bf16 %v300_v6, %v299_v7 }
 0x10d   : > { %1321 = vrot.lane.b32.xlu1 %v1320_v8, %s1414_s9 }
 0x10f   : > { %v409_v31 = vpop.permute.xlu0 %408 }
 0x111   : > { %1326 = vrot.lane.b32.xlu1 %v1320_v8, %s1417_s11 }
 0x113   : > { %v446_v60 = vpop.permute.xlu0 %445 }
 0x115   : > { %403 = vperm.xlu1 %1331, %v399_v10  }
 0x119   : > { %418 = vperm.xlu1 %1331, %v415_v13  }
 0x17f   : > { %v1322_v14 = vpop.permute.xlu1 %1321 }
 0x180   : > { %v1324_v15 = vunpack.i.h.bf16 %v1322_v14  ;;  %v1323_v16 = vunpack.i.l.bf16 %v1322_v14 }
 0x182   : > { %v322_v17 = vpack.c.bf16 %v1324_v15, %v1324_v15  ;;  %v316_v18 = vsel %vm315_vm2, %v1323_v16, %v1324_v15  ;;  %vm791_vm2 = vcmask 1047584  }
 0x183   : > { %v1327_v19 = vpop.permute.xlu1 %1326  ;;  %v321_v20 = vpack.c.bf16 %v316_v18, %v316_v18 }
 0x184   : > { %v1329_v21 = vunpack.i.h.bf16 %v1327_v19  ;;  %v1328_v22 = vunpack.i.l.bf16 %v1327_v19  ;;  %1208 = vmatprep.subr.msk.bf16.mxu0 %vm341_vm3, %v322_v17 }
 0x185   : > { %v343_v23 = vsel %vm341_vm3, %v321_v20, 0 }
 0x186   : > { %v320_v24 = vpack.c.bf16 %v1329_v21, %v300_v6  ;;  %361 = vmatpush1.bf16.msra.mxu0 %v343_v23  ;;  %v308_v25 = vsel %vm307_vm4, %v1328_v22, %v1329_v21 }
 0x187   : > { %v319_v26 = vpack.c.bf16 %v308_v25, %v299_v7 }
 0x188   : > { %362 = vmatprep.subr.bf16.mxu0 %v320_v24 }
 0x18a   : > { %363 = vmatpush1.bf16.msra.mxu0 %v319_v26 }
 0x18d   : > { %1209 = vmatmul.mubr.msk.bf16.vlgmr.msra.gmra.mxu0 %vm334_vm5, %v1352_v27 }
 0x18e   : > { %390 = vmatprep.mubr.bf16.mxu0 %v1416_v9 }
 0x190   : > { %v404_v42 = vpop.permute.xlu1 %403 }
 0x194   : > { %v419_v59 = vpop.permute.xlu1 %418 }
 0x195   : > { %1210 = vmatmul.mubr.msk.bf16.gmra.mxu0 %vm334_vm5, %v1353_v28 }
 0x196   : > { %770 = vmatprep.mubr.bf16.mxu0 %v1416_v9 }
 0x24d   : > { %v382_v29 = vpop.f32.mrf.mxu0 }
 0x24e   : > { %v411_v43 = vadd.f32 %v404_v42, %v382_v29 }
 0x24f   : > { %v384_v30 = vpop.f32.mrf.mxu0 }
 0x250   : > { %v412_v45 = vadd.f32 %v404_v42, %v384_v30 }
 0x251   : > { %v386_v32 = vpop.f32.mrf.mxu0 }
 0x252   : > { %v413_v33 = vadd.f32 %v409_v31, %v386_v32 }
 0x253   : > { %v388_v34 = vpop.f32.mrf.mxu0 }
 0x254   : > { %v1211_v35 = vmul.f32 -1.442695, %v413_v33  ;;  %v414_v36 = vadd.f32 %v409_v31, %v388_v34 }
 0x255   : > { %v392_v37 = vpop.f32.mrf.mxu0 }
 0x256   : > { %1358 = vpow2.f32 %v1211_v35  ;;  %v1212_v38 = vmul.f32 -1.442695, %v414_v36  ;;  %v421_v62 = vadd.f32 %v419_v59, %v392_v37 }
 0x257   : > { %v394_v39 = vpop.f32.mrf.mxu0 }
 0x258   : > { %1360 = vpow2.f32 %v1212_v38  ;;  %v422_v1 = vadd.f32 %v419_v59, %v394_v39  ;;  %v1223_v38 = vld [vmem:[%s1657_s3 + $0x10] sm:$0xff]  ;;  %v1224_v39 = vld [vmem:[%s1657_s3 + $0x18] sm:$0xff] }
 0x259   : > { %v396_v40 = vpop.f32.mrf.mxu0  ;;  %1362 = vtanh.f32 %v411_v43 }
 0x25a   : > { %v1229_v40 = vld [vmem:[%s1659_s5 + $0x8] sm:$0xff] }
 0x25b   : > { %v397_v41 = vpop.f32.mrf.mxu0 }
 0x25c   : > { %v1225_v41 = vld [vmem:[%s1658_s4 + $0x8] sm:$0xff] }
 0x263   : > { %v1359_v44 = vpop.eup %1358 }
 0x264   : > { %v431_v46 = vadd.f32 1.0, %v1359_v44 }
 0x265   : > { %v1361_v47 = vpop.eup %1360 }
 0x266   : > { %1364 = vrcp.f32 %v431_v46  ;;  %v432_v48 = vadd.f32 1.0, %v1361_v47  ;;  %v1363_v49 = vpop.eup %1362 }
 0x267   : > { %1366 = vtanh.f32 %v412_v45 }
 0x268   : > { %1368 = vrcp.f32 %v432_v48 }
 0x273   : > { %v1365_v50 = vpop.eup %1364 }
 0x274   : > { %v1367_v51 = vpop.eup %1366  ;;  %v437_v52 = vmul.f32 %v1365_v50, %v1363_v49  ;;  %v1354_v49 = vld [vmem:[%s1655_s1 + $0xc] sm:$0xff]   ;;  %v1355_v50 = vld [vmem:[%s1655_s1 + $0x14] ss:$0 sps:$4 sm:$0xff]  }
 0x275   : > { %v1369_v53 = vpop.eup %1368 }
 0x276   : > { %v438_v54 = vmul.f32 %v1369_v53, %v1367_v51  ;;  %v440_v55 = vpack.c.bf16 %v437_v52, %v437_v52 }
 0x278   : > { %v441_v56 = vpack.c.bf16 %v438_v54, %v438_v54  ;;  %v453_v57 = vsel %vm341_vm3, %v440_v55, 0 }
 0x27a   : > { %1213 = vmatprep.subr.msk.bf16.mxu1 %vm341_vm3, %v441_v56 }
 0x27b   : > { %473 = vmatpush1.bf16.msra.mxu1 %v453_v57 }
 0x27e   : > { %1214 = vmatmul.mubr.msk.bf16.vlgmr.msra.gmra.mxu1 %vm448_vm6, %v439_v58 }
 0x27f   : > { %657 = vmatprep.mubr.bf16.mxu1 %v1416_v9 }
 0x33e   : > { %v492_v61 = vpop.f32.mrf.mxu1 }
 0x33f   : > { %v493_v63 = vadd.f32 %v492_v61, %v446_v60 }
 0x340   : > { %v494_v0 = vpop.f32.mrf.mxu1 }
 0x341   : > { %v499_v2 = vadd.f32 %v493_v63, %v421_v62  ;;  %v495_v3 = vadd.f32 %v494_v0, %v446_v60 }
 0x342   : > { %v496_v4 = vpop.f32.mrf.mxu1 }
 0x343   : > { %v500_v5 = vadd.f32 %v495_v3, %v422_v1  ;;  %503 = vrot.lane.b32.xlu1 %v499_v2, %s1418_s29 }
 0x344   : > { %v497_v6 = vpop.f32.mrf.mxu1 }
 0x3b5   : > { %v504_v7 = vpop.permute.xlu1 %503 }
 0x3b6   : > { %512 = vst.msk [vmem:[#allocation2] sm:$0xff] %vm511_vm7, %v504_v7  ;;  %vm838_vm7 = vcmask 64568  }
 0x3bd   : > { %v518_v8 = vld [vmem:[#allocation2] sm:$0xff] }
 0x3be   : > { %520 = vrot.lane.b32.xlu0 %v518_v8, %s1414_s9 }
 0x430   : > { %v521_v10 = vpop.permute.xlu0 %520 }
 0x431   : > { %524 = vst.msk [vmem:[#allocation2] sm:$0xff] %vm290_vm0, %v521_v10 }
 0x438   : > { %v525_v11 = vld [vmem:[#allocation2] sm:$0xff] }
 0x439   : > { %527 = vrot.lane.b32.xlu1 %v525_v11, %s1419_s30 }
 0x4ab   : > { %v528_v12 = vpop.permute.xlu1 %527 }
 0x4ac   : > { %531 = vst.msk [vmem:[#allocation2] sm:$0xff] %vm530_vm8, %v528_v12 }
 0x4b3   : > { %v532_v13 = vld [vmem:[#allocation2] sm:$0xff] }
 0x4b4   : > { %534 = vrot.lane.b32.xlu0 %v532_v13, %s1420_s7 }
 0x526   : > { %v535_v14 = vpop.permute.xlu0 %534 }
 0x527   : > { %538 = vst.msk [vmem:[#allocation2] sm:$0xff] %vm537_vm9, %v535_v14 }
 0x52e   : > { %v539_v15 = vld [vmem:[#allocation2] sm:$0xff] }
 0x52f   : > { %541 = vrot.lane.b32.xlu1 %v539_v15, %s1415_s10 }
 0x533   : > { %505 = vrot.lane.b32.xlu1 %v500_v5, %s1418_s29 }
 0x5a1   : > { %v542_v16 = vpop.permute.xlu1 %541 }
 0x5a2   : > { %545 = vst.msk [vmem:[#allocation2] sm:$0xff] %vm297_vm1, %v542_v16  ;;  %v1228_v16 = vld [vmem:[%s1656_s2 + $0x4] sm:$0xf] }
 0x5a5   : > { %v506_v17 = vpop.permute.xlu1 %505 }
 0x5a6   : > { %v508_v18 = vsel %vm507_vm10, %v504_v7, %v506_v17  ;;  %vm859_vm10 = vcmask 39968  }
 0x5a7   : > { %514 = vst.msk [vmem:[#allocation2 + $0x8] sm:$0xff] %vm513_vm11, %v508_v18  ;;  %vm887_vm11 = vcmask 269568  }
 0x5a9   : > { %v546_v19 = vld [vmem:[#allocation2] sm:$0xff] }
 0x5aa   : > { %548 = vrot.lane.b32.xlu0 %v546_v19, %s1421_s12 }
 0x5ae   : > { %v561_v24 = vld [vmem:[#allocation2 + $0x8] sm:$0xff] }
 0x61c   : > { %v549_v20 = vpop.permute.xlu0 %548 }
 0x61d   : > { %552 = vst.msk [vmem:[#allocation2] sm:$0xff] %vm551_vm12, %v549_v20 }
 0x624   : > { %v553_v21 = vld [vmem:[#allocation2] sm:$0xff] }
 0x625   : > { %555 = vrot.lane.b32.xlu0 %v553_v21, %s1422_s13 }
 0x697   : > { %v556_v22 = vpop.permute.xlu0 %555 }
 0x698   : > { %559 = vst.msk [vmem:[#allocation2] sm:$0xff] %vm558_vm13, %v556_v22 }
 0x69f   : > { %v560_v23 = vld [vmem:[#allocation2] sm:$0xff] }
 0x6a0   : > { %v1337_v25 = vpack.i.bf16 %v561_v24, %v560_v23 }
 0x6a2   : > { %1338 = vrot.lane.b32.xlu0 %v1337_v25, %s1423_s14  ;;  %1333 = vrot.lane.b32.xlu1 %v1337_v25, %s1420_s7 }
 0x714   : > { %v1339_v26 = vpop.permute.xlu0 %1338  ;;  %v1334_v27 = vpop.permute.xlu1 %1333 }
 0x715   : > { %v1341_v28 = vunpack.i.h.bf16 %v1339_v26  ;;  %v1340_v29 = vunpack.i.l.bf16 %v1339_v26  ;;  %v1336_v30 = vunpack.i.h.bf16 %v1334_v27  ;;  %v1335_v31 = vunpack.i.l.bf16 %v1334_v27 }
 0x717   : > { %v583_v32 = vpack.c.bf16 %v1336_v30, %v1336_v30  ;;  %v577_v33 = vsel %vm576_vm14, %v1335_v31, %v1336_v30  ;;  %v569_v35 = vsel %vm568_vm15, %v1340_v29, %v1341_v28  ;;  %v581_v36 = vpack.c.bf16 %v1341_v28, %v561_v24 }
 0x718   : > { %v582_v34 = vpack.c.bf16 %v577_v33, %v577_v33  ;;  %v580_v37 = vpack.c.bf16 %v569_v35, %v560_v23  ;;  %vm787_vm14 = vcmask 31744   ;;  %vm793_vm15 = vcmask 179200  }
 0x719   : > { %606 = vrot.lane.b32.xlu0 %v583_v32, %s1417_s11 }
 0x71a   : > { %604 = vrot.lane.b32.xlu1 %v582_v34, %s1417_s11 }
 0x71d   : > { %602 = vrot.lane.b32.xlu0 %v581_v36, %s1417_s11 }
 0x71e   : > { %600 = vrot.lane.b32.xlu1 %v580_v37, %s1417_s11 }
 0x721   : > { %681 = vperm.xlu0 %1330, %v1223_v38  }
 0x722   : > { %686 = vperm.xlu1 %1331, %v1224_v39  }
 0x725   : > { %726 = vperm.xlu0 %1330, %v1229_v40  }
 0x726   : > { %697 = vperm.xlu1 %1331, %v1225_v41  }
 0x78b   : > { %v607_v42 = vpop.permute.xlu0 %606 }
 0x78c   : > { %1220 = vmatprep.subr.msk.bf16.mxu1 %vm341_vm3, %v607_v42  ;;  %v605_v43 = vpop.permute.xlu1 %604 }
 0x78d   : > { %v610_v44 = vsel %vm307_vm4, %v605_v43, %v607_v42 }
 0x78e   : > { %v620_v45 = vsel %vm341_vm3, %v610_v44, 0 }
 0x78f   : > { %v603_v46 = vpop.permute.xlu0 %602  ;;  %638 = vmatpush1.bf16.msra.mxu1 %v620_v45 }
 0x790   : > { %639 = vmatprep.subr.bf16.mxu1 %v603_v46  ;;  %v601_v47 = vpop.permute.xlu1 %600 }
 0x791   : > { %v609_v48 = vsel %vm307_vm4, %v601_v47, %v603_v46  ;;  %vm824_vm4 = vcmask 80968  }
 0x793   : > { %640 = vmatpush1.bf16.msra.mxu1 %v609_v48 }
 0x796   : > { %1221 = vmatmul.mubr.msk.bf16.vlgmr.msra.gmra.mxu1 %vm334_vm5, %v1354_v49 }
 0x797   : > { %667 = vmatprep.mubr.bf16.mxu1 %v1416_v9 }
 0x79c   : > { %v682_v63 = vpop.permute.xlu0 %681 }
 0x79d   : > { %v687_v53 = vpop.permute.xlu1 %686 }
 0x79e   : > { %1222 = vmatmul.mubr.msk.bf16.gmra.mxu1 %vm334_vm5, %v1355_v50 }
 0x7a0   : > { %v727_v17 = vpop.permute.xlu0 %726 }
 0x7a1   : > { %v698_v18 = vpop.permute.xlu1 %697 }
 0x856   : > { %v659_v51 = vpop.f32.mrf.mxu1 }
 0x857   : > { %v689_v0 = vadd.f32 %v682_v63, %v659_v51 }
 0x858   : > { %v661_v52 = vpop.f32.mrf.mxu1 }
 0x859   : > { %v690_v2 = vadd.f32 %v682_v63, %v661_v52 }
 0x85a   : > { %v663_v54 = vpop.f32.mrf.mxu1 }
 0x85b   : > { %v691_v55 = vadd.f32 %v687_v53, %v663_v54 }
 0x85c   : > { %v665_v56 = vpop.f32.mrf.mxu1 }
 0x85d   : > { %v1226_v57 = vmul.f32 -1.442695, %v691_v55  ;;  %v692_v58 = vadd.f32 %v687_v53, %v665_v56 }
 0x85e   : > { %v669_v59 = vpop.f32.mrf.mxu1 }
 0x85f   : > { %1370 = vpow2.f32 %v1226_v57  ;;  %v1227_v60 = vmul.f32 -1.442695, %v692_v58  ;;  %v700_v20 = vadd.f32 %v698_v18, %v669_v59 }
 0x860   : > { %v671_v61 = vpop.f32.mrf.mxu1 }
 0x861   : > { %1372 = vpow2.f32 %v1227_v60  ;;  %v701_v23 = vadd.f32 %v698_v18, %v671_v61 }
 0x862   : > { %v673_v9 = vpop.f32.mrf.mxu1  ;;  %1374 = vtanh.f32 %v689_v0 }
 0x864   : > { %v674_v62 = vpop.f32.mrf.mxu1 }
 0x86c   : > { %v1371_v1 = vpop.eup %1370 }
 0x86d   : > { %v710_v3 = vadd.f32 1.0, %v1371_v1 }
 0x86e   : > { %v1373_v4 = vpop.eup %1372 }
 0x86f   : > { %1376 = vrcp.f32 %v710_v3  ;;  %v711_v5 = vadd.f32 1.0, %v1373_v4  ;;  %v1375_v6 = vpop.eup %1374 }
 0x870   : > { %1378 = vtanh.f32 %v690_v2 }
 0x871   : > { %1380 = vrcp.f32 %v711_v5 }
 0x87c   : > { %v1377_v7 = vpop.eup %1376 }
 0x87d   : > { %v1379_v8 = vpop.eup %1378  ;;  %v716_v10 = vmul.f32 %v1377_v7, %v1375_v6  ;;  %v1356_v6 = vld [vmem:[%s1655_s1 + $0x18] sm:$0xff]  }
 0x87e   : > { %v1381_v11 = vpop.eup %1380  ;;  %1260 = vmatprep.mubr.msk.bf16.mxu1 %vm334_vm5, %v1356_v6 }
 0x87f   : > { %v717_v12 = vmul.f32 %v1381_v11, %v1379_v8  ;;  %v720_v13 = vpack.c.bf16 %v716_v10, %v716_v10 }
 0x881   : > { %v721_v14 = vpack.c.bf16 %v717_v12, %v717_v12  ;;  %v733_v15 = vsel %vm341_vm3, %v720_v13, 0 }
 0x883   : > { %1230 = vmatprep.subr.msk.bf16.mxu0 %vm341_vm3, %v721_v14 }
 0x884   : > { %753 = vmatpush1.bf16.msra.mxu0 %v733_v15 }
 0x887   : > { %1231 = vmatmul.mubr.msk.bf16.vlgmr.msra.gmra.mxu0 %vm448_vm6, %v1228_v16 }
 0x947   : > { %v772_v19 = vpop.f32.mrf.mxu0 }
 0x948   : > { %v773_v21 = vadd.f32 %v772_v19, %v727_v17 }
 0x949   : > { %v774_v22 = vpop.f32.mrf.mxu0 }
 0x94a   : > { %v779_v24 = vadd.f32 %v773_v21, %v700_v20  ;;  %v775_v25 = vadd.f32 %v774_v22, %v727_v17  ;;  %v1239_v20 = vld [vmem:[%s1657_s3 + $0x20] sm:$0xff]  ;;  %v1240_v21 = vld [vmem:[%s1657_s3 + $0x28] sm:$0xff]  ;;  %v1244_v22 = vld [vmem:[%s1659_s5 + $0x10] sm:$0xff] }
 0x94b   : > { %v776_v26 = vpop.f32.mrf.mxu0 }
 0x94c   : > { %v1590_v27 = vadd.f32 %v775_v25, %v701_v23  ;;  %783 = vrot.lane.b32.xlu1 %v779_v24, %s1421_s12  ;;  %v1241_v23 = vld [vmem:[%s1658_s4 + $0x10] sm:$0xff] }
 0x94d   : > { %v777_v28 = vpop.f32.mrf.mxu0 }
 0x9be   : > { %v1593_v29 = vpop.permute.xlu1 %783 }
 0x9bf   : > { %792 = vst.msk [vmem:[#allocation2] sm:$0xff] %vm791_vm2, %v1593_v29  ;;  %vm915_vm2 = vcmask 302368  }
 0x9c6   : > { %v798_v30 = vld [vmem:[#allocation2] sm:$0xff] }
 0x9c7   : > { %800 = vrot.lane.b32.xlu0 %v798_v30, %s1414_s9  ;;  %s1425_s9 = smov 118  }
 0xa39   : > { %v801_v31 = vpop.permute.xlu0 %800 }
 0xa3a   : > { %804 = vst.msk [vmem:[#allocation2] sm:$0xff] %vm290_vm0, %v801_v31  ;;  %vm831_vm0 = vcmask 72768   ;;  %v1357_v31 = vld [vmem:[%s1655_s1 + $0x20] ss:$0 sps:$4 sm:$0xff]  }
 0xa41   : > { %v805_v32 = vld [vmem:[#allocation2] sm:$0xff] }
 0xa42   : > { %807 = vrot.lane.b32.xlu1 %v805_v32, %s1419_s30  ;;  %v1437_v32 = vmov 0.0  }
 0xa43   : > { %1264 = vmatprep.subr.bf16.mxu0 %v1437_v32 }
 0xab4   : > { %v808_v33 = vpop.permute.xlu1 %807 }
 0xab5   : > { %811 = vst.msk [vmem:[#allocation2] sm:$0xff] %vm530_vm8, %v808_v33  ;;  %vm845_vm8 = vcmask 56368  }
 0xabc   : > { %v812_v34 = vld [vmem:[#allocation2] sm:$0xff] }
 0xabd   : > { %814 = vrot.lane.b32.xlu0 %v812_v34, %s1420_s7  ;;  %s1427_s7 = smov 114  }
 0xb2f   : > { %v815_v35 = vpop.permute.xlu0 %814 }
 0xb30   : > { %818 = vst.msk [vmem:[#allocation2] sm:$0xff] %vm537_vm9, %v815_v35  ;;  %vm852_vm9 = vcmask 48168  }
 0xb37   : > { %v819_v36 = vld [vmem:[#allocation2] sm:$0xff] }
 0xb38   : > { %821 = vrot.lane.b32.xlu1 %v819_v36, %s1424_s15 }
 0xbaa   : > { %v822_v37 = vpop.permute.xlu1 %821 }
 0xbab   : > { %825 = vst.msk [vmem:[#allocation2] sm:$0xff] %vm824_vm4, %v822_v37  ;;  %vm922_vm4 = vcmask 310568  }
 0xbb2   : > { %v826_v38 = vld [vmem:[#allocation2] sm:$0xff] }
 0xbb3   : > { %828 = vrot.lane.b32.xlu0 %v826_v38, %s1425_s9 }
 0xc25   : > { %v829_v39 = vpop.permute.xlu0 %828 }
 0xc26   : > { %832 = vst.msk [vmem:[#allocation2] sm:$0xff] %vm831_vm0, %v829_v39  ;;  %vm940_vm0 = vcmask 900096  }
 0xc2d   : > { %v833_v40 = vld [vmem:[#allocation2] sm:$0xff] }
 0xc2e   : > { %835 = vrot.lane.b32.xlu1 %v833_v40, %s1426_s16 }
 0xca0   : > { %v836_v41 = vpop.permute.xlu1 %835 }
 0xca1   : > { %839 = vst.msk [vmem:[#allocation2] sm:$0xff] %vm838_vm7, %v836_v41  ;;  %vm932_vm7 = vcmask 973824  }
 0xca8   : > { %v840_v42 = vld [vmem:[#allocation2] sm:$0xff] }
 0xca9   : > { %842 = vrot.lane.b32.xlu0 %v840_v42, %s1427_s7 }
 0xd1b   : > { %v843_v43 = vpop.permute.xlu0 %842 }
 0xd1c   : > { %846 = vst.msk [vmem:[#allocation2] sm:$0xff] %vm845_vm8, %v843_v43  ;;  %vm972_vm8 = vcmask 1014784  }
 0xd23   : > { %v847_v44 = vld [vmem:[#allocation2] sm:$0xff] }
 0xd24   : > { %849 = vrot.lane.b32.xlu1 %v847_v44, %s1428_s17 }
 0xd96   : > { %v850_v45 = vpop.permute.xlu1 %849 }
 0xd97   : > { %853 = vst.msk [vmem:[#allocation2] sm:$0xff] %vm852_vm9, %v850_v45  ;;  %vm1438_vm9 = vmmov 0  }
 0xd98   : > { %1266 = vmatprep.mubr.msk.bf16.mxu0 %vm1438_vm9, %v1437_v32 }
 0xd9e   : > { %v854_v46 = vld [vmem:[#allocation2] sm:$0xff] }
 0xd9f   : > { %856 = vrot.lane.b32.xlu0 %v854_v46, %s1429_s18 }
 0xe11   : > { %v857_v47 = vpop.permute.xlu0 %856 }
 0xe12   : > { %860 = vst.msk [vmem:[#allocation2] sm:$0xff] %vm859_vm10, %v857_v47 }
 0xe19   : > { %v861_v48 = vld [vmem:[#allocation2] sm:$0xff] }
 0xe1a   : > { %863 = vrot.lane.b32.xlu1 %v861_v48, %s1415_s10  ;;  %s1431_s10 = smov 10  }
 0xe8c   : > { %v864_v49 = vpop.permute.xlu1 %863 }
 0xe8d   : > { %867 = vst.msk [vmem:[#allocation2] sm:$0xff] %vm297_vm1, %v864_v49  ;;  %vm894_vm1 = vcmask 277768   ;;  %v1243_v49 = vld [vmem:[%s1656_s2 + $0x8] sm:$0xf] }
 0xe94   : > { %v868_v50 = vld [vmem:[#allocation2] sm:$0xff] }
 0xe95   : > { %870 = vrot.lane.b32.xlu0 %v868_v50, %s1421_s12 }
 0xf07   : > { %v871_v51 = vpop.permute.xlu0 %870 }
 0xf08   : > { %874 = vst.msk [vmem:[#allocation2] sm:$0xff] %vm551_vm12, %v871_v51  ;;  %vm901_vm12 = vcmask 285968  }
 0xf0f   : > { %v875_v52 = vld [vmem:[#allocation2] sm:$0xff] }
 0xf10   : > { %877 = vrot.lane.b32.xlu1 %v875_v52, %s1422_s13  ;;  %s1433_s13 = smov 14  }
 0xf82   : > { %v878_v53 = vpop.permute.xlu1 %877 }
 0xf83   : > { %881 = vst.msk [vmem:[#allocation2] sm:$0xff] %vm558_vm13, %v878_v53  ;;  %vm908_vm13 = vcmask 294168  }
 0xf8a   : > { %v882_v54 = vld [vmem:[#allocation2] sm:$0xff] }
 0xf8b   : > { %884 = vrot.lane.b32.xlu0 %v882_v54, %s1430_s19 }
 0xffd   : > { %v885_v55 = vpop.permute.xlu0 %884 }
 0xffe   : > { %888 = vst.msk [vmem:[#allocation2] sm:$0xff] %vm887_vm11, %v885_v55 }
0x1005   : > { %v889_v56 = vld [vmem:[#allocation2] sm:$0xff] }
0x1006   : > { %891 = vrot.lane.b32.xlu1 %v889_v56, %s1431_s10 }
0x1078   : > { %v892_v57 = vpop.permute.xlu1 %891 }
0x1079   : > { %895 = vst.msk [vmem:[#allocation2] sm:$0xff] %vm894_vm1, %v892_v57 }
0x1080   : > { %v896_v58 = vld [vmem:[#allocation2] sm:$0xff] }
0x1081   : > { %898 = vrot.lane.b32.xlu0 %v896_v58, %s1432_s20 }
0x10f3   : > { %v899_v59 = vpop.permute.xlu0 %898 }
0x10f4   : > { %902 = vst.msk [vmem:[#allocation2] sm:$0xff] %vm901_vm12, %v899_v59 }
0x10fb   : > { %v903_v60 = vld [vmem:[#allocation2] sm:$0xff] }
0x10fc   : > { %905 = vrot.lane.b32.xlu1 %v903_v60, %s1433_s13 }
0x1100   : > { %785 = vrot.lane.b32.xlu1 %v1590_v27, %s1421_s12  ;;  %s1436_s12 = smov 119  }
0x116e   : > { %v906_v61 = vpop.permute.xlu1 %905 }
0x116f   : > { %909 = vst.msk [vmem:[#allocation2] sm:$0xff] %vm908_vm13, %v906_v61 }
0x1172   : > { %v786_v9 = vpop.permute.xlu1 %785 }
0x1173   : > { %v788_v62 = vsel %vm787_vm14, %v1593_v29, %v786_v9 }
0x1174   : > { %794 = vst.msk [vmem:[#allocation2 + $0x8] sm:$0xff] %vm793_vm15, %v788_v62 }
0x1176   : > { %v910_v63 = vld [vmem:[#allocation2] sm:$0xff] }
0x1177   : > { %912 = vrot.lane.b32.xlu0 %v910_v63, %s1434_s21 }
0x117b   : > { %v925_v4 = vld [vmem:[#allocation2 + $0x8] sm:$0xff] }
0x11e9   : > { %v913_v0 = vpop.permute.xlu0 %912 }
0x11ea   : > { %916 = vst.msk [vmem:[#allocation2] sm:$0xff] %vm915_vm2, %v913_v0 }
0x11f1   : > { %v917_v1 = vld [vmem:[#allocation2] sm:$0xff] }
0x11f2   : > { %919 = vrot.lane.b32.xlu0 %v917_v1, %s1435_s25 }
0x1264   : > { %v920_v2 = vpop.permute.xlu0 %919 }
0x1265   : > { %923 = vst.msk [vmem:[#allocation2] sm:$0xff] %vm922_vm4, %v920_v2 }
0x126c   : > { %v924_v3 = vld [vmem:[#allocation2] sm:$0xff] }
0x126d   : > { %v1347_v5 = vpack.i.bf16 %v925_v4, %v924_v3 }
0x126f   : > { %1348 = vrot.lane.b32.xlu0 %v1347_v5, %s1436_s12  ;;  %1343 = vrot.lane.b32.xlu1 %v1347_v5, %s1429_s18 }
0x12e1   : > { %v1349_v7 = vpop.permute.xlu0 %1348  ;;  %v1344_v8 = vpop.permute.xlu1 %1343 }
0x12e2   : > { %v1351_v10 = vunpack.i.h.bf16 %v1349_v7  ;;  %v1350_v11 = vunpack.i.l.bf16 %v1349_v7  ;;  %v1346_v12 = vunpack.i.h.bf16 %v1344_v8  ;;  %v1345_v13 = vunpack.i.l.bf16 %v1344_v8 }
0x12e4   : > { %v947_v14 = vpack.c.bf16 %v1346_v12, %v1346_v12  ;;  %v941_v15 = vsel %vm940_vm0, %v1345_v13, %v1346_v12  ;;  %v933_v17 = vsel %vm932_vm7, %v1350_v11, %v1351_v10  ;;  %v945_v18 = vpack.c.bf16 %v1351_v10, %v925_v4 }
0x12e5   : > { %v946_v16 = vpack.c.bf16 %v941_v15, %v941_v15  ;;  %v944_v19 = vpack.c.bf16 %v933_v17, %v924_v3 }
0x12e6   : > { %970 = vrot.lane.b32.xlu0 %v947_v14, %s1419_s30 }
0x12e7   : > { %968 = vrot.lane.b32.xlu1 %v946_v16, %s1419_s30 }
0x12ea   : > { %966 = vrot.lane.b32.xlu0 %v945_v18, %s1419_s30 }
0x12eb   : > { %964 = vrot.lane.b32.xlu1 %v944_v19, %s1419_s30 }
0x12ee   : > { %1038 = vperm.xlu0 %1330, %v1239_v20  }
0x12ef   : > { %1043 = vperm.xlu1 %1331, %v1240_v21  }
0x12f2   : > { %1071 = vperm.xlu0 %1330, %v1244_v22  }
0x12f3   : > { %1052 = vperm.xlu1 %1331, %v1241_v23  }
0x1358   : > { %v971_v24 = vpop.permute.xlu0 %970 }
0x1359   : > { %v969_v25 = vpop.permute.xlu1 %968 }
0x135a   : > { %v974_v26 = vsel %vm972_vm8, %v969_v25, %v971_v24 }
0x135b   : > { %v983_v27 = vsel %vm341_vm3, %v974_v26, 0  ;;  %1270 = vmatprep.subr.msk.bf16.mxu1 %vm341_vm3, %v974_v26 }
0x135c   : > { %v967_v28 = vpop.permute.xlu0 %966  ;;  %1257 = vmatpush3.bf16.msra.mxu1 %v983_v27 }
0x135d   : > { %v965_v29 = vpop.permute.xlu1 %964 }
0x135e   : > { %v973_v30 = vsel %vm972_vm8, %v965_v29, %v967_v28 }
0x135f   : > { %1258 = vmatprep.subr.bf16.mxu1 %v973_v30 }
0x1360   : > { %1259 = vmatpush3.bf16.msra.mxu1 %v973_v30 }
0x1363   : > { %1261 = vmatmul.mubr.msk.bf16.vlgmr.msra.gmra.mxu1 %vm334_vm5, %v1357_v31 }
0x1369   : > { %v1039_v40 = vpop.permute.xlu0 %1038 }
0x136a   : > { %v1044_v36 = vpop.permute.xlu1 %1043 }
0x136d   : > { %v1072_v50 = vpop.permute.xlu0 %1071 }
0x136e   : > { %v1053_v51 = vpop.permute.xlu1 %1052 }
0x1423   : > { %v1262_v33 = vpop.f32.mrf.mxu1 }
0x1424   : > { %v1055_v53 = vadd.f32 %v1262_v33, %v1053_v51 }
0x1425   : > { %v1019_v34 = vpop.f32.mrf.mxu1 }
0x1426   : > { %v1046_v41 = vadd.f32 %v1039_v40, %v1019_v34 }
0x1427   : > { %v1263_v35 = vpop.f32.mrf.mxu1 }
0x1429   : > { %v1022_v37 = vpop.f32.mrf.mxu1 }
0x142a   : > { %v1047_v38 = vadd.f32 %v1044_v36, %v1022_v37 }
0x142c   : > { %v1242_v39 = vmul.f32 -1.442695, %v1047_v38 }
0x142e   : > { %1382 = vpow2.f32 %v1242_v39 }
0x142f   : > { %1384 = vtanh.f32 %v1046_v41 }
0x143b   : > { %v1383_v42 = vpop.eup %1382 }
0x143c   : > { %v1060_v43 = vadd.f32 1.0, %v1383_v42  ;;  %v1385_v44 = vpop.eup %1384 }
0x143e   : > { %1386 = vrcp.f32 %v1060_v43 }
0x144b   : > { %v1387_v45 = vpop.eup %1386 }
0x144c   : > { %v1063_v46 = vmul.f32 %v1387_v45, %v1385_v44 }
0x144e   : > { %v1066_v47 = vpack.c.bf16 %v1063_v46, %v1063_v46 }
0x1450   : > { %v1078_v48 = vsel %vm341_vm3, %v1066_v47, 0 }
0x1451   : > { %1265 = vmatpush3.bf16.msra.mxu0 %v1078_v48 }
0x1454   : > { %1267 = vmatmul.mubr.msk.bf16.vlgmr.msra.gmra.mxu0 %vm448_vm6, %v1243_v49 }
0x1514   : > { %v1114_v52 = vpop.f32.mrf.mxu0 }
0x1515   : > { %v1115_v54 = vadd.f32 %v1114_v52, %v1072_v50 }
0x1516   : > { %v1268_v55 = vpop.f32.mrf.mxu0 }
0x1517   : > { %v1120_v56 = vadd.f32 %v1115_v54, %v1055_v53 }
0x1518   : > { %v1117_v57 = vpop.f32.mrf.mxu0 }
0x1519   : > { %1121 = vst [vmem:[%s1498_s8] sm:$0xff] %v1120_v56 }
0x151a   : > { %v1269_v58 = vpop.f32.mrf.mxu0 }
0x151b PF: > { %s16_s23 = sadd.s32 1, %s1412_s23   ;;  %s1661_s21 = smov %s1408_s22 }
0x151c   : > { %p13_p5 = scmp.ge.s32.totalorder %s16_s23, 4   ;;  %s1662_s22 = smov %s1664_s24 }
0x151e   :  { %15 = sbr.rel (!%p13_p5) target bundleno = 2 (0x2), region = 132 }
0x1523   :  { %1147 = vsyncmov [#allocation3] }
0x1526   :  { %s1148_s10 = vpop.sfrf %1147 }
0x1527   :  { %p1248_p6 = scmp.ne.s32.totalorder %s1148_s10, 0 }
0x1529   :  { %1152 = shalt.err (%p1248_p6)  }

</bundles_post_ra>
